<compile_context>
chip_gen: v7x
topology: tpu7x:2x2x1
jax: 0.10.0
libtpu: 0.0.40
codegen_flags: <defaults>
</compile_context>

<pallas_src>
import jax
import jax.numpy as jnp
from jax.experimental import pallas as pl
from jax.experimental.pallas import tpu as pltpu

BN_EPS = 1e-5                       # PyTorch BatchNorm2d default eps
_ROWS_CAP = 32768                   # max flat rows per tile (8k-32k sweet spot)
_VMEM_FALLBACK = 64 * 1024 * 1024   # assume v7x-sized VMEM if the query fails


def _round_up(x, m):
    return ((x + m - 1) // m) * m


def _vmem_capacity_bytes():
    try:
        return int(pltpu.get_tpu_info().vmem_capacity_bytes)
    except Exception:
        return _VMEM_FALLBACK


def _const_spec(shape):
    """BlockSpec for grid-invariant operands; single-buffered to save VMEM."""
    index_map = lambda *_: (0,) * len(shape)
    try:
        return pl.BlockSpec(shape, index_map, pipeline_mode=pl.Buffered(1))
    except Exception:  # older jax without pipeline_mode / Buffered
        return pl.BlockSpec(shape, index_map)


def _plan_tiles(bs, k, c0, channel_widths):
    """Pick (tile_s groups/tile, n_par, bs_pad, vmem_limit) from the VMEM budget."""
    cap = _vmem_capacity_bytes()
    vmem_limit = min(cap * 3 // 4, 100 * 1024 * 1024)  # ~96 MiB v5e/v6e, ~48 MiB v7x

    cmax = max([c0] + list(channel_widths))
    c_last = channel_widths[-1]
    const_bytes, prev = 0, c0
    for c in channel_widths:
        const_bytes += prev * c * 2 + 2 * c * 4        # bf16 W + f32 scale/shift
        prev = c
    # Per flat row: 2x-buffered bf16 input + f32 matmul/relu temps at the widest
    # layer + bf16 recast + amortized f32 pooled-output rows.
    per_row = (2 * (2 * c0) + 2 * (4 * cmax) + 2 * cmax
               + (2 * 4 * c_last + k - 1) // max(k, 1) + 16)
    budget = max(vmem_limit // 2 - const_bytes, per_row * 8 * k)
    rows = min(budget // per_row, _ROWS_CAP)

    # TODO(synk): for group_all with very large nsample a K-axis grid with a
    # running max would bound VMEM independent of nsample; not needed here.
    tile_s = max(8, min(rows // k, _round_up(bs, 8)))
    tile_s = max(8, (tile_s // 8) * 8)
    n_tiles = -(-bs // tile_s)
    n_par = 2 if n_tiles >= 2 else 1                   # megacore split of stats
    n_tiles = _round_up(n_tiles, n_par)
    # Rebalance tile_s to minimize padding (never grows, so it stays VMEM-safe).
    tile_s = max(8, _round_up(-(-bs // n_tiles), 8))
    bs_pad = n_tiles * tile_s
    return tile_s, n_par, bs_pad, vmem_limit


# ----------------------------- Pallas kernels ----------------------------- #

def _bn_stats_pass(x2d, prev_params, w_cur, m_true, tile_s, k, n_par, vmem_limit):
    """Per-channel [sum; sum_sq] of layer-i pre-BN activations over the true rows.

    Returns [n_par, 2, C_i] f32 partial stats (one slab per grid-parallel shard);
    the caller sums over axis 0.
    """
    m_pad, c0 = x2d.shape
    rows = tile_s * k
    n_tiles = m_pad // rows
    steps = n_tiles // n_par
    n_prev = len(prev_params)
    c_out = w_cur.shape[1]

    def kernel(*refs):
        x_ref = refs[0]
        prev = refs[1:1 + 3 * n_prev]
        w_cur_ref = refs[1 + 3 * n_prev]
        stats_ref = refs[2 + 3 * n_prev]

        p = pl.program_id(0)
        s = pl.program_id(1)

        h = x_ref[...]
        for j in range(n_prev):
            w, sc, sh = prev[3 * j], prev[3 * j + 1], prev[3 * j + 2]
            y = jnp.dot(h, w[...], preferred_element_type=jnp.float32)
            h = jnp.maximum(y * sc[...] + sh[...], 0.0).astype(jnp.bfloat16)

        @pl.when(s == 0)
        def _():
            stats_ref[...] = jnp.zeros_like(stats_ref)

        def accum(hv):
            y = jnp.dot(hv, w_cur_ref[...], preferred_element_type=jnp.float32)
            ysum = jnp.sum(y, axis=0, keepdims=True)
            ysq = jnp.sum(y * y, axis=0, keepdims=True)
            stats_ref[...] += jnp.concatenate([ysum, ysq], axis=0)[None]

        if n_prev == 0:
            # Layer 0: zero-padded rows are exactly zero (no conv bias), so they
            # contribute nothing to sum/sumsq -- no mask needed on any step.
            accum(h)
        else:
            start = (p * steps + s) * rows
            has_pad = (start + rows) > m_true

            @pl.when(jnp.logical_not(has_pad))
            def _():
                accum(h)

            @pl.when(has_pad)
            def _():
                # Mask the narrow bf16 activations before the final dot so padded
                # rows contribute zero; only traced work on boundary tiles runs.
                row = jax.lax.broadcasted_iota(jnp.int32, (rows, 1), 0) + start
                accum(jnp.where(row < m_true, h, jnp.zeros_like(h)))

    in_specs = [pl.BlockSpec((rows, c0), lambda p, s: (p * steps + s, 0))]
    args = [x2d]
    flops = 0
    for (w, sc, sh) in prev_params:
        in_specs += [_const_spec(w.shape), _const_spec(sc.shape), _const_spec(sh.shape)]
        args += [w, sc, sh]
        flops += 2 * m_pad * w.shape[0] * w.shape[1]
    in_specs.append(_const_spec(w_cur.shape))
    args.append(w_cur)
    flops += 2 * m_pad * w_cur.shape[0] * w_cur.shape[1]
    bytes_accessed = int(sum(a.size * a.dtype.itemsize for a in args)
                         + n_par * 2 * c_out * 4)

    return pl.pallas_call(
        kernel,
        out_shape=jax.ShapeDtypeStruct((n_par, 2, c_out), jnp.float32),
        grid=(n_par, steps),
        in_specs=in_specs,
        out_specs=pl.BlockSpec((1, 2, c_out), lambda p, s: (p, 0, 0)),
        compiler_params=pltpu.CompilerParams(
            dimension_semantics=("parallel", "arbitrary"),
            vmem_limit_bytes=vmem_limit),
        cost_estimate=pl.CostEstimate(flops=int(flops), transcendentals=0,
                                      bytes_accessed=bytes_accessed),
    )(*args)


def _mlp_apply_max_pass(x2d, layer_params, tile_s, k, vmem_limit):
    """Fused: full MLP chain (matmul + BN-apply + ReLU) and max over nsample.

    x2d: [M_pad, C0] bf16;  returns [BS_pad, C_last_pad] f32 (lane-dense).
    """
    m_pad, c0 = x2d.shape
    rows = tile_s * k
    bs_pad = m_pad // k
    n_layers = len(layer_params)
    c_out = layer_params[-1][0].shape[1]     # already a multiple of 128
    grid = (m_pad // rows,)

    def kernel(*refs):
        x_ref = refs[0]
        params = refs[1:1 + 3 * n_layers]
        o_ref = refs[-1]

        h = x_ref[...]
        for j in range(n_layers):
            w, sc, sh = params[3 * j], params[3 * j + 1], params[3 * j + 2]
            y = jnp.dot(h, w[...], preferred_element_type=jnp.float32)
            a = jnp.maximum(y * sc[...] + sh[...], 0.0)
            h = a.astype(jnp.bfloat16) if j + 1 < n_layers else a
        # torch.max(new_points, 2)[0]: reduce over the nsample axis in VMEM.
        o_ref[...] = jnp.max(h.reshape(tile_s, k, c_out), axis=1)

    in_specs = [pl.BlockSpec((rows, c0), lambda s: (s, 0))]
    args = [x2d]
    flops = 0
    for (w, sc, sh) in layer_params:
        in_specs += [_const_spec(w.shape), _const_spec(sc.shape), _const_spec(sh.shape)]
        args += [w, sc, sh]
        flops += 2 * m_pad * w.shape[0] * w.shape[1]
    bytes_accessed = int(sum(a.size * a.dtype.itemsize for a in args)
                         + bs_pad * c_out * 4)

    return pl.pallas_call(
        kernel,
        out_shape=jax.ShapeDtypeStruct((bs_pad, c_out), jnp.float32),
        grid=grid,
        in_specs=in_specs,
        out_specs=pl.BlockSpec((tile_s, c_out), lambda s: (s, 0)),
        compiler_params=pltpu.CompilerParams(
            dimension_semantics=("parallel",),
            vmem_limit_bytes=vmem_limit),
        cost_estimate=pl.CostEstimate(flops=int(flops), transcendentals=0,
                                      bytes_accessed=bytes_accessed),
    )(*args)


# ------------------------- plain-JAX glue (grouping) ----------------------- #

def square_distance(src, dst):
    dist = -2.0 * jnp.matmul(src, jnp.transpose(dst, (0, 2, 1)))
    dist = dist + jnp.sum(src ** 2, -1)[:, :, None]
    dist = dist + jnp.sum(dst ** 2, -1)[:, None, :]
    return dist


def index_points(points, idx):
    B = points.shape[0]
    batch_idx = jnp.arange(B).reshape((B,) + (1,) * (idx.ndim - 1))
    return points[batch_idx, idx]


def farthest_point_sample(xyz, npoint, key):
    # TODO(synk): torch.randint gives a nondeterministic start index; we seed it.
    B, N, _ = xyz.shape
    farthest = jax.random.randint(key, (B,), 0, N, dtype=jnp.int32)
    distance = jnp.full((B, N), 1e10, jnp.float32)
    centroids = jnp.zeros((B, npoint), jnp.int32)
    batch_idx = jnp.arange(B)

    def body(i, carry):
        cents, dist_acc, far = carry
        cents = cents.at[:, i].set(far)
        centroid = xyz[batch_idx, far][:, None, :]
        d = jnp.sum((xyz - centroid) ** 2, -1)
        dist_acc = jnp.minimum(dist_acc, d)
        far = jnp.argmax(dist_acc, -1).astype(jnp.int32)
        return cents, dist_acc, far

    centroids, _, _ = jax.lax.fori_loop(0, npoint, body,
                                        (centroids, distance, farthest))
    return centroids


def query_ball_point(radius, nsample, xyz, new_xyz):
    B, N, _ = xyz.shape
    S = new_xyz.shape[1]
    sqrdists = square_distance(new_xyz, xyz)
    idx = jnp.broadcast_to(jnp.arange(N, dtype=jnp.int32), (B, S, N))
    masked = jnp.where(sqrdists > radius ** 2, N, idx)
    # nsample smallest masked indices in ascending order == PyTorch's
    # sort(dim=-1)[:, :, :nsample], via top_k (O(N*nsample)) instead of a sort.
    group_idx = -jax.lax.top_k(-masked, nsample)[0]
    group_first = group_idx[:, :, 0:1]
    group_idx = jnp.where(group_idx == N, group_first, group_idx)
    return group_idx


def sample_and_group(npoint, radius, nsample, xyz, points, key):
    fps_idx = farthest_point_sample(xyz, npoint, key)
    new_xyz = index_points(xyz, fps_idx)                      # [B, S, 3]
    idx = query_ball_point(radius, nsample, xyz, new_xyz)     # [B, S, K]
    grouped_xyz = index_points(xyz, idx)                      # [B, S, K, 3]
    grouped_xyz_norm = grouped_xyz - new_xyz[:, :, None, :]
    if points is not None:
        grouped_points = index_points(points, idx)
        new_points = jnp.concatenate([grouped_xyz_norm, grouped_points], -1)
    else:
        new_points = grouped_xyz_norm
    return new_xyz, new_points


def sample_and_group_all(xyz, points):
    B, N, C = xyz.shape
    new_xyz = jnp.zeros((B, 1, C), xyz.dtype)
    grouped_xyz = xyz[:, None, :, :]
    if points is not None:
        new_points = jnp.concatenate([grouped_xyz, points[:, None, :, :]], -1)
    else:
        new_points = grouped_xyz
    return new_xyz, new_points


# ------------------------------- the module -------------------------------- #

def init_params(key, in_channel, mlp):
    # NOTE: the Conv2d bias is intentionally not created: training-mode BN
    # subtracts the per-channel batch mean, which cancels the bias exactly.
    params = []
    last = in_channel
    for out in mlp:
        key, kw = jax.random.split(key)
        bound = 1.0 / float(last) ** 0.5
        w = jax.random.uniform(kw, (last, out), jnp.float32, -bound, bound)
        gamma = jnp.ones((1, out), jnp.float32)
        beta = jnp.zeros((1, out), jnp.float32)
        params.append((w, gamma, beta))
        last = out
    return params


class PointNetSetAbstractionPallas:
    def __init__(self, npoint, radius, nsample, in_channel, mlp, group_all, key):
        self.npoint = npoint
        self.radius = radius
        self.nsample = nsample
        self.group_all = group_all
        self.params = init_params(key, in_channel, mlp)

    def __call__(self, xyz, points, fps_key):
        # xyz: [B, 3, N], points: [B, D, N]  (PyTorch axis convention)
        xyz = jnp.transpose(xyz, (0, 2, 1))
        if points is not None:
            points = jnp.transpose(points, (0, 2, 1))
        if self.group_all:
            new_xyz, new_points = sample_and_group_all(xyz, points)
        else:
            new_xyz, new_points = sample_and_group(
                self.npoint, self.radius, self.nsample, xyz, points, fps_key)

        B, S, K, C0 = new_points.shape
        BS = B * S
        m_true = BS * K                      # BN reduces over N*H*W = B*K*S

        # Lane-dense final layer: pad the last conv's output channels up to a
        # multiple of 128 so the fused-max output store is unmasked; padded
        # channels are zero-weight (hence zero) and get sliced off below.
        c_last_true = self.params[-1][0].shape[1]
        c_last_pad = max(128, _round_up(c_last_true, 128))
        ws, gammas, betas = [], [], []
        for i, (w, g, b) in enumerate(self.params):
            if i == len(self.params) - 1 and c_last_pad != c_last_true:
                padc = c_last_pad - c_last_true
                w = jnp.pad(w, ((0, 0), (0, padc)))
                g = jnp.pad(g, ((0, 0), (0, padc)), constant_values=1.0)
                b = jnp.pad(b, ((0, 0), (0, padc)))
            ws.append(w.astype(jnp.bfloat16))
            gammas.append(g)
            betas.append(b)
        widths = [w.shape[1] for w in ws]

        tile_s, n_par, bs_pad, vmem_limit = _plan_tiles(BS, K, C0, widths)

        # Channels-last [M, C0] bf16 slab, zero-padded at group granularity.
        # TODO(synk): the cast/pad/reshape still costs one extra XLA pass over
        # the slab; folding it into the grouping gather would shave one read.
        x = new_points.astype(jnp.bfloat16).reshape(BS, K, C0)
        if bs_pad != BS:
            x = jnp.pad(x, ((0, bs_pad - BS), (0, 0), (0, 0)))
        x2d = x.reshape(bs_pad * K, C0)

        # Per layer: stats pass (global sum / sumsq over M), then fold BN into
        # a per-channel scale/shift used by subsequent recomputation passes.
        finalized = []
        count = float(m_true)
        for i in range(len(ws)):
            stats = _bn_stats_pass(x2d, finalized, ws[i], m_true,
                                   tile_s, K, n_par, vmem_limit)
            stats = jnp.sum(stats, axis=0)             # merge per-core partials
            mean = stats[0:1, :] / count
            # NOTE: E[x^2]-E[x]^2 in f32; clamp tiny negative cancellation error.
            var = jnp.maximum(stats[1:2, :] / count - mean * mean, 0.0)
            inv_std = jax.lax.rsqrt(var + BN_EPS)
            scale = gammas[i] * inv_std
            shift = betas[i] - mean * scale
            finalized.append((ws[i], scale, shift))

        out = _mlp_apply_max_pass(x2d, finalized, tile_s, K, vmem_limit)
        new_points_out = (out[:BS, :c_last_true]
                          .reshape(B, S, c_last_true).transpose(0, 2, 1))   # [B, C, S]
        new_xyz_out = jnp.transpose(new_xyz, (0, 2, 1))                      # [B, 3, S]
        return new_xyz_out, new_points_out


if __name__ == "__main__":
    key = jax.random.PRNGKey(0)
    k_xyz, k_pts, k_param, k_fps = jax.random.split(key, 4)

    B, N, D = 2, 16, 3
    npoint, radius, nsample = 4, 0.4, 8
    mlp = [32, 64]
    in_channel = D + 3  # grouped features = [grouped_xyz_norm (3) | points (D)]

    xyz = jax.random.uniform(k_xyz, (B, 3, N), jnp.float32)
    points = jax.random.normal(k_pts, (B, D, N), jnp.float32)

    sa = PointNetSetAbstractionPallas(npoint, radius, nsample, in_channel, mlp,
                                      group_all=False, key=k_param)
    new_xyz, new_points = sa(xyz, points, k_fps)
    jax.block_until_ready((new_xyz, new_points))

    assert new_xyz.shape == (B, 3, npoint), new_xyz.shape
    assert new_points.shape == (B, mlp[-1], npoint), new_points.shape
    assert bool(jnp.all(jnp.isfinite(new_points)))
    print("KERNEL_OK")
</pallas_src>

<mosaic_0001>
module attributes {stable_mosaic.version = 11 : i64} {
  func.func @kernel(%arg0: i32, %arg1: i32, %arg2: memref<64x6xbf16, #tpu.memory_space<vmem>>, %arg3: memref<6x32xbf16, #tpu.memory_space<vmem>>, %arg4: memref<1x2x32xf32, #tpu.memory_space<vmem>>) attributes {dimension_semantics = [#tpu.dimension_semantics<parallel>, #tpu.dimension_semantics<arbitrary>], iteration_bounds = array<i64: 1, 1>, scalar_prefetch = 0 : i64, scratch_operands = 0 : i64, tpu.core_type = #tpu.core_type<tc>, window_params = [{transform_indices = @transform_0, window_bounds = array<i64: 64, 6>}, {pipeline_mode = #tpu.pipeline_mode<synchronous>, transform_indices = @transform_1, window_bounds = array<i64: 6, 32>}, {transform_indices = @transform_2, window_bounds = array<i64: 1, 2, 32>}]} {
    %c0 = arith.constant 0 : index
    %c0_0 = arith.constant 0 : index
    %0 = vector.load %arg2[%c0, %c0_0] : memref<64x6xbf16, #tpu.memory_space<vmem>>, vector<64x6xbf16>
    %c0_i32 = arith.constant 0 : i32
    %1 = arith.cmpi eq, %arg1, %c0_i32 : i32
    %2 = arith.extui %1 : i1 to i32
    %c0_i32_1 = arith.constant 0 : i32
    %3 = arith.cmpi ne, %2, %c0_i32_1 : i32
    scf.if %3 {
      %cst_12 = arith.constant 0.000000e+00 : f32
      %16 = vector.broadcast %cst_12 : f32 to vector<1x2x32xf32>
      %c0_13 = arith.constant 0 : index
      %c0_14 = arith.constant 0 : index
      %c0_15 = arith.constant 0 : index
      %17 = vector.load %arg4[%c0_13, %c0_14, %c0_15] : memref<1x2x32xf32, #tpu.memory_space<vmem>>, vector<1x2x32xf32>
      tpu.vector_store %arg4[%c0_13, %c0_14, %c0_15], %16 {strides = array<i32>} : memref<1x2x32xf32, #tpu.memory_space<vmem>>, vector<1x2x32xf32>,
    } else {
    }
    %c0_2 = arith.constant 0 : index
    %c0_3 = arith.constant 0 : index
    %4 = vector.load %arg3[%c0_2, %c0_3] : memref<6x32xbf16, #tpu.memory_space<vmem>>, vector<6x32xbf16>
    %cst = arith.constant dense<0.000000e+00> : vector<64x32xf32>
    %5 = tpu.matmul %0, %4, %cst {dimension_numbers = #tpu.dot_dimension_numbers<[1], [0], [0], [1], [0, 0, 1, 1], [], []>} : vector<64x6xbf16>, vector<6x32xbf16>, vector<64x32xf32> -> vector<64x32xf32>
    %cst_4 = arith.constant dense<0.000000e+00> : vector<32xf32>
    %6 = vector.multi_reduction <add>, %5, %cst_4 [0] : vector<64x32xf32> to vector<32xf32>
    %7 = vector.shape_cast %6 : vector<32xf32> to vector<1x32xf32>
    %8 = arith.mulf %5, %5 : vector<64x32xf32>
    %cst_5 = arith.constant dense<0.000000e+00> : vector<32xf32>
    %9 = vector.multi_reduction <add>, %8, %cst_5 [0] : vector<64x32xf32> to vector<32xf32>
    %10 = vector.shape_cast %9 : vector<32xf32> to vector<1x32xf32>
    %c0_6 = arith.constant 0 : index
    %c0_7 = arith.constant 0 : index
    %c0_8 = arith.constant 0 : index
    %11 = vector.load %arg4[%c0_6, %c0_7, %c0_8] : memref<1x2x32xf32, #tpu.memory_space<vmem>>, vector<1x2x32xf32>
    %12 = tpu.concatenate %7, %10 in 0 : vector<1x32xf32>, vector<1x32xf32> -> vector<2x32xf32>
    %13 = vector.shape_cast %12 : vector<2x32xf32> to vector<1x2x32xf32>
    %14 = arith.addf %11, %13 : vector<1x2x32xf32>
    %c0_9 = arith.constant 0 : index
    %c0_10 = arith.constant 0 : index
    %c0_11 = arith.constant 0 : index
    %15 = vector.load %arg4[%c0_9, %c0_10, %c0_11] : memref<1x2x32xf32, #tpu.memory_space<vmem>>, vector<1x2x32xf32>
    tpu.vector_store %arg4[%c0_9, %c0_10, %c0_11], %14 {strides = array<i32>} : memref<1x2x32xf32, #tpu.memory_space<vmem>>, vector<1x2x32xf32>,
    return
  }
  func.func @transform_0(%arg0: i32, %arg1: i32) -> (i32, i32) {
    %c1_i32 = arith.constant 1 : i32
    %0 = arith.muli %arg0, %c1_i32 : i32
    %1 = arith.addi %0, %arg1 : i32
    %c0_i32 = arith.constant 0 : i32
    %c0_i32_0 = arith.constant 0 : i32
    return %1, %c0_i32 : i32, i32
  }
  func.func @transform_1(%arg0: i32, %arg1: i32) -> (i32, i32) {
    %c0_i32 = arith.constant 0 : i32
    %c0_i32_0 = arith.constant 0 : i32
    %c0_i32_1 = arith.constant 0 : i32
    return %c0_i32, %c0_i32_0 : i32, i32
  }
  func.func @transform_2(%arg0: i32, %arg1: i32) -> (i32, i32, i32) {
    %c0_i32 = arith.constant 0 : i32
    %c0_i32_0 = arith.constant 0 : i32
    %c0_i32_1 = arith.constant 0 : i32
    return %arg0, %c0_i32, %c0_i32_0 : i32, i32, i32
  }
}

</mosaic_0001>

<bundles_post_ra>
// kernel: tpu_custom_call.1
= control target key start
LH: loop header
LB: loop body
LE: loop exit
PB: predicated region body
PF: predicated region fallthrough
CT: control target
= control target key end

     0   :  { %vm83_vm0 = vcmask 1042432   ;;  %vm70_vm1 = vcmask 48128   ;;  %s348_s0 = inlined_call_operand.vmem [shape: bf16[64,6], index: 0, kind: input, shape index: {}]   ;;  %s349_s1 = inlined_call_operand.vmem [shape: bf16[6,32], index: 1, kind: input, shape index: {}]   ;;  %s350_s2 = inlined_call_operand.hbm [shape: f32[1,2,32], index: 2, kind: output, shape index: {}]  }
   0x1   :  { %v49_v0 = vld [vmem:[%s349_s1] sm:$0x7]  ;;  %v259_v3 = vld [vmem:[%s348_s0 + $0x8] sm:$0xff]   ;;  %v260_v4 = vld [vmem:[%s348_s0 + $0x10] sm:$0xff]  }
   0x2   :  { %v258_v1 = vld [vmem:[%s348_s0] sm:$0xff]   ;;  %254 = vmatprep.subr.msk.bf16.mxu0 %vm83_vm0, %v49_v0  ;;  %v85_v2 = vsel %vm83_vm0, %v49_v0, 0  ;;  %255 = vmatprep.subr.msk.bf16.mxu1 %vm83_vm0, %v49_v0  ;;  %v261_v5 = vld [vmem:[%s348_s0 + $0x18] sm:$0xff]  }
   0x3   :  { %243 = vmatpush3.bf16.msra.mxu0 %v85_v2  ;;  %244 = vmatprep.mubr.msk.bf16.mxu0 %vm70_vm1, %v258_v1 }
   0x4   :  { %253 = vmatpush3.bf16.msra.mxu1 %v85_v2 }
   0x5   :  { %7 = vsyncpa [#allocation3], 0  ;;  %248 = vmatprep.mubr.msk.bf16.mxu1 %vm70_vm1, %v260_v4  ;;  %vm47_vm2 = vcmask 254976   ;;  %v286_v6 = vmov 0.0   ;;  %vm152_vm3 = vcmask 261120   ;;  %vm204_vm4 = vcmask 1040384  }
   0x6   :  { %245 = vmatmul.mubr.msk.bf16.vlgmr.msra.gmra.mrb[0].mxu0 %vm70_vm1, %v259_v3  ;;  %48 = vst.msk [vmem:[#allocation2] sm:$0x3] %vm47_vm2, %v286_v6  ;;  %s287_s0 = smov [#allocation2]  }
   0x7   :  { %249 = vmatmul.mubr.msk.bf16.vlgmr.msra.gmra.mrb[0].mxu1 %vm70_vm1, %v261_v5  ;;  %s215_s18 = sshll.u32 %s287_s0, 4  ;;  %s216_s18 = int_to_ptr.vmem [resolvable:$true] %s215_s18 }
   0x8   :  { %s262_s19 = scalar_lea.vmem %s216_s18, 32  ;;  %p267_p1 = scmp.lt.s32.totalorder %s216_s18, %s216_s18 }
   0x9   :  { %p263_p0 = scmp.ne.s32.totalorder %s216_s18, %s262_s19  ;;  %p268_p2 = scmp.lt.s32.totalorder %s262_s19, %s262_s19 }
   0xb   :  { %p269_p3 = por %p268_p2, %p267_p1 }
   0xd   :  { %v203_v1 = vld [vmem:[#allocation2] sm:$0x3]  ;;  %p270_p4 = pnand %p269_p3, %p263_p0 }
  0xd9   :  { %v246_v7 = vpop.f32.mrb[0].mxu0 }
  0xda   :  { %v121_v8 = vpop.f32.mrb[1].mxu0  ;;  %v250_v9 = vpop.f32.mrb[0].mxu1  ;;  %v176_v15 = vmul.f32 %v246_v7, %v246_v7  ;;  %v156_v20 = vsel %vm152_vm3, %v246_v7, 0.0 }
  0xdb   :  { %v174_v10 = vmul.f32 %v121_v8, %v121_v8  ;;  %v247_v11 = vpop.f32.mrb[2].mxu0  ;;  %v137_v12 = vpop.f32.mrb[1].mxu1  ;;  %v153_v16 = vsel %vm152_vm3, %v121_v8, 0.0  ;;  %v180_v38 = vmul.f32 %v250_v9, %v250_v9  ;;  %v164_v42 = vsel %vm152_vm3, %v250_v9, 0.0 }
  0xdc   :  { %v124_v13 = vpop.f32.mrb[3].mxu0  ;;  %v251_v14 = vpop.f32.mrb[2].mxu1  ;;  %v177_v23 = vmul.f32 %v247_v11, %v247_v11  ;;  %v178_v25 = vmul.f32 %v137_v12, %v137_v12  ;;  %v185_v28 = vsel %vm152_vm3, %v176_v15, 0.0  ;;  %v158_v29 = vsel %vm152_vm3, %v247_v11, 0.0 }
  0xdd   :  { %v154_v17 = vsel %vm152_vm3, %v124_v13, 0.0  ;;  %v175_v18 = vmul.f32 %v124_v13, %v124_v13  ;;  %v140_v19 = vpop.f32.mrb[3].mxu1  ;;  %v182_v22 = vsel %vm152_vm3, %v174_v10, 0.0  ;;  %v160_v30 = vsel %vm152_vm3, %v137_v12, 0.0 }
  0xde   :  { %v155_v21 = vadd.f32 %v154_v17, %v153_v16  ;;  %v187_v33 = vsel %vm152_vm3, %v177_v23, 0.0  ;;  %v189_v34 = vsel %vm152_vm3, %v178_v25, 0.0  ;;  %v179_v35 = vmul.f32 %v140_v19, %v140_v19 }
  0xdf   :  { %v183_v24 = vsel %vm152_vm3, %v175_v18, 0.0  ;;  %v162_v39 = vsel %vm152_vm3, %v140_v19, 0.0  ;;  %v181_v43 = vmul.f32 %v251_v14, %v251_v14  ;;  %v193_v47 = vsel %vm152_vm3, %v180_v38, 0.0 }
  0xe0   :  { %v157_v26 = vadd.f32 %v156_v20, %v155_v21  ;;  %v184_v27 = vadd.f32 %v183_v24, %v182_v22  ;;  %v191_v44 = vsel %vm152_vm3, %v179_v35, 0.0  ;;  %v166_v48 = vsel %vm152_vm3, %v251_v14, 0.0 }
  0xe1   :  { %v195_v51 = vsel %vm152_vm3, %v181_v43, 0.0 }
  0xe2   :  { %v186_v31 = vadd.f32 %v185_v28, %v184_v27  ;;  %v159_v32 = vadd.f32 %v158_v29, %v157_v26 }
  0xe4   :  { %v161_v36 = vadd.f32 %v160_v30, %v159_v32  ;;  %v188_v37 = vadd.f32 %v187_v33, %v186_v31 }
  0xe6   :  { %v190_v40 = vadd.f32 %v189_v34, %v188_v37  ;;  %v163_v41 = vadd.f32 %v162_v39, %v161_v36 }
  0xe8   :  { %v165_v45 = vadd.f32 %v164_v42, %v163_v41  ;;  %v192_v46 = vadd.f32 %v191_v44, %v190_v40 }
  0xea   :  { %v167_v49 = vadd.f32 %v166_v48, %v165_v45  ;;  %v194_v50 = vadd.f32 %v193_v47, %v192_v46 }
  0xec   :  { %v168_v52 = vrot.slane %v167_v49, 4  ;;  %v196_v53 = vadd.f32 %v195_v51, %v194_v50 }
  0xee   :  { %v169_v54 = vadd.f32 %v168_v52, %v167_v49  ;;  %v197_v55 = vrot.slane %v196_v53, 4 }
  0xf0   :  { %v170_v56 = vrot.slane %v169_v54, 2  ;;  %v198_v57 = vadd.f32 %v197_v55, %v196_v53 }
  0xf2   :  { %v171_v58 = vadd.f32 %v170_v56, %v169_v54  ;;  %v199_v59 = vrot.slane %v198_v57, 2 }
  0xf4   :  { %v172_v60 = vrot.slane %v171_v58, 1  ;;  %v200_v61 = vadd.f32 %v199_v59, %v198_v57 }
  0xf6   :  { %v201_v62 = vrot.slane %v200_v61, 1  ;;  %v173_v63 = vadd.f32 %v172_v60, %v171_v58 }
  0xf8   :  { %v202_v0 = vadd.f32 %v201_v62, %v200_v61 }
  0xfa   :  { %v205_v2 = vsel %vm204_vm4, %v173_v63, %v202_v0 }
  0xfb   :  { %v206_v3 = vadd.f32 %v205_v2, %v203_v1 }
  0xfd   :  { %208 = vst.msk [vmem:[#allocation2] sm:$0x3] %vm47_vm2, %v206_v3 }
  0xfe   :  { %273 = shalt.err (!%p270_p4)
}
  0xff   :  { %s274_s22 = scalar_lea.hbm %s350_s2, 32 }
 0x100   :  { %p275_p5 = scmp.ne.s32.totalorder %s350_s2, %s274_s22  ;;  %p278_p6 = scmp.lt.u32.totalorder %s274_s22, %s350_s2 }
 0x102   :  { %p280_p7 = pnand %p278_p6, %p275_p5 }
 0x104   :  { %283 = shalt.err (!%p280_p7)
}
 0x105   :  { %218 = dma.vmem_to_hbm [thread:$0]  %s216_s18, 32, %s350_s2, [#allocation3]  }
 0x106   :  { %284 = dma.done.wait [#allocation3], 32  }
 0x107   :  { %285 = vsyncadd [#allocation3], 4294967264 }
 0x108   :  { %222 = vsyncpa [#allocation3], 1 }

</bundles_post_ra>
